<compile_context>
chip_gen: v5e
topology: v5e:2x2
jax: 0.10.0
libtpu: 0.0.40
codegen_flags: <defaults>
</compile_context>

<pallas_src>
import functools
import math

import jax
import jax.numpy as jnp
from jax.experimental import pallas as pl
from jax.experimental.pallas import tpu as pltpu


def _round_up(x, m):
    return ((x + m - 1) // m) * m


def _cdiv(a, b):
    return (a + b - 1) // b


def _vmem_capacity_bytes():
    """Per-TensorCore VMEM size; conservative (v7x-sized) fallback."""
    try:
        info = pltpu.get_tpu_info()
        cap = getattr(info, "vmem_capacity_bytes", None)
        if cap:
            return int(cap)
    except Exception:
        pass
    return 64 << 20


def _make_conv_kernel(kh, kw, wp, tn, bt, cinp, cout, lane_chunk):
    """Kernel body for one (Bt, Cout, TN) lane-dense output block.

    x_main_ref: (Bt, Cinp, TN)       flat padded input, tile n
    x_halo_ref: (Bt, Cinp, DPAD)     flat padded input right after tile n
    w_ref:      (Cout, kh*kw*Cinp)   weights, cols grouped by tap then channel
    b_ref:      (Cout, 1)            bias
    o_ref:      (Bt, Cout, TN)       over-complete flat output tile
    slab_ref:   (kh*kw*Cinp, Bt*TN)  VMEM scratch slab (deep-K MXU RHS)
    """
    n_off = kh * kw

    def kernel(x_main_ref, x_halo_ref, w_ref, b_ref, o_ref, slab_ref):
        # --- 1) assemble the deep-K slab: rows grouped by tap, lanes by image.
        for t in range(n_off):                       # unrolled kh*kw (static)
            i, j = divmod(t, kw)
            d = i * wp + j                           # static in-window shift
            r0 = t * cinp
            for bb in range(bt):
                c0 = bb * tn
                if d == 0:
                    slab_ref[r0:r0 + cinp, c0:c0 + tn] = x_main_ref[bb]
                else:
                    slab_ref[r0:r0 + cinp, c0:c0 + tn - d] = \
                        x_main_ref[bb, :, d:]
                    slab_ref[r0:r0 + cinp, c0 + tn - d:c0 + tn] = \
                        x_halo_ref[bb, :, :d]

        # --- 2) one deep-K MXU matmul per lane chunk (bounds vreg pressure).
        w = w_ref[...]                               # (Cout, K) resident, tiny
        b = b_ref[...]                               # (Cout, 1)
        for bb in range(bt):
            c0 = bb * tn
            for s0 in range(0, tn, lane_chunk):
                sz = min(lane_chunk, tn - s0)        # multiple of 128
                res = jnp.dot(w, slab_ref[:, c0 + s0:c0 + s0 + sz],
                              preferred_element_type=jnp.float32)
                o_ref[bb, :, s0:s0 + sz] = (res + b).astype(o_ref.dtype)

    return kernel


@functools.partial(jax.jit, static_argnames=("stride", "padding", "tn", "use_bf16"))
def convolution_pload_forward(x, weight, bias, *, stride=1, padding=0,
                              tn=2048, use_bf16=False):
    """Forward pass of Convolution_pload.

    x:      (B, Cin, H, W)       float32
    weight: (Cout, Cin, kh, kw)  float32
    bias:   (Cout, 1, 1)         float32
    returns (B, Cout, out_h, out_w)  (NCHW, same as the PyTorch module)
    """
    B, Cin, H, W = x.shape
    Cout, _, kh, kw = weight.shape
    s, p = stride, padding

    Hp, Wp = H + 2 * p, W + 2 * p
    out_h = (Hp - kh) // s + 1
    out_w = (Wp - kw) // s + 1
    P = Hp * Wp

    compute_dtype = jnp.bfloat16 if use_bf16 else x.dtype
    itemsize = jnp.dtype(compute_dtype).itemsize
    out_itemsize = jnp.dtype(x.dtype).itemsize
    sub = 16 if itemsize == 2 else 8                 # sublane multiple
    cinp = _round_up(Cin, sub)                       # padded input channels
    K = kh * kw * cinp                               # fused MXU contraction dim

    # ---- flat-output tiling --------------------------------------------------
    d_max = (kh - 1) * Wp + (kw - 1)                 # largest in-window shift
    dpad = _round_up(max(d_max, 1), 128)             # halo block width (lanes)
    m_max = (out_h - 1) * s * Wp + (out_w - 1) * s   # last valid flat position
    n_needed = m_max + 1

    vmem_cap = _vmem_capacity_bytes()
    budget = vmem_cap // 2                           # 32 MiB v7x, 64 MiB v5e/v6e

    def step_bytes(tn_e, bt_):
        return (2 * bt_ * cinp * (tn_e + dpad) * itemsize    # dbl-buffered x
                + 2 * bt_ * Cout * tn_e * out_itemsize       # dbl-buffered out
                + Cout * K * itemsize + Cout * 4             # resident w + bias
                + K * bt_ * tn_e * itemsize)                 # slab scratch

    # Keep the halo re-read bounded (tn >= 4*dpad) when the problem allows it,
    # but don't overshoot tiny problems; shrink if it wouldn't fit in VMEM.
    tn_eff = _round_up(max(tn, 4 * dpad), dpad)
    tn_eff = min(tn_eff, _round_up(n_needed, dpad))
    while tn_eff > dpad and step_bytes(tn_eff, 1) > budget // 2:
        tn_eff = max(dpad, _round_up(tn_eff // 2, dpad))

    num_tiles = _cdiv(n_needed, tn_eff)
    n_total = num_tiles * tn_eff
    flat_padded = (num_tiles + 1) * tn_eff           # room for the last halo
    assert num_tiles * tn_eff + dpad <= flat_padded  # halo never reads OOB
    pad_tail = max(0, flat_padded - P)
    hblk = tn_eff // dpad                            # halo block-index stride

    # ---- batch blocking ------------------------------------------------------
    target_lanes = 4096
    bt = max(1, min(B, 8, target_lanes // max(tn_eff, 1)))
    while bt > 1 and step_bytes(tn_eff, bt) > budget:
        bt -= 1
    while bt > 1 and _cdiv(B, bt) * num_tiles < 2:   # keep >=2 steps (v7x 2 TCs)
        bt -= 1
    Bpad = _cdiv(B, bt) * bt

    # ---- inputs in kernel-friendly layout ------------------------------------
    xp = jnp.pad(x, ((0, 0), (0, 0), (p, p), (p, p)))
    xf = xp.reshape(B, Cin, P).astype(compute_dtype)
    xf = jnp.pad(xf, ((0, Bpad - B), (0, cinp - Cin), (0, pad_tail)))

    # w2[co, (i*kw+j)*cinp + ci] = weight[co, ci, i, j]  (matches slab layout)
    w2 = weight.transpose(0, 2, 3, 1)                        # (Cout, kh, kw, Cin)
    w2 = jnp.pad(w2, ((0, 0), (0, 0), (0, 0), (0, cinp - Cin)))
    w2 = w2.reshape(Cout, K).astype(compute_dtype)
    b2 = bias.reshape(Cout, 1).astype(jnp.float32)

    # Cap the per-matmul result to ~64 KiB of vregs (multiple of 128 lanes).
    lane_chunk = min(tn_eff, max(128, (65536 // (Cout * 4)) // 128 * 128))

    kernel = _make_conv_kernel(kh, kw, Wp, tn_eff, bt, cinp, Cout, lane_chunk)

    need = step_bytes(tn_eff, bt)
    vmem_limit = int(min(max(4 * need, 16 << 20), budget))
    vmem_limit = max(vmem_limit, int(1.5 * need))

    cost = pl.CostEstimate(
        flops=int(2 * Bpad * num_tiles * tn_eff * K * Cout),
        transcendentals=0,
        bytes_accessed=int(Bpad * num_tiles * cinp * (tn_eff + dpad) * itemsize
                           + Cout * K * itemsize + Cout * 4
                           + Bpad * num_tiles * Cout * tn_eff * out_itemsize),
    )

    out_flat = pl.pallas_call(
        kernel,
        out_shape=jax.ShapeDtypeStruct((Bpad, Cout, n_total), x.dtype),
        grid_spec=pltpu.PrefetchScalarGridSpec(
            num_scalar_prefetch=0,
            grid=(Bpad // bt, num_tiles),
            in_specs=[
                # main tile of the flat plane
                pl.BlockSpec((bt, cinp, tn_eff), lambda b, n: (b, 0, n)),
                # small halo block immediately after the main tile
                pl.BlockSpec((bt, cinp, dpad), lambda b, n: (b, 0, (n + 1) * hblk)),
                # full weight / bias, resident across the grid
                pl.BlockSpec((Cout, K), lambda b, n: (0, 0)),
                pl.BlockSpec((Cout, 1), lambda b, n: (0, 0)),
            ],
            out_specs=pl.BlockSpec((bt, Cout, tn_eff), lambda b, n: (b, 0, n)),
            scratch_shapes=[pltpu.VMEM((K, bt * tn_eff), compute_dtype)],
        ),
        compiler_params=pltpu.CompilerParams(
            dimension_semantics=("parallel", "parallel"),
            vmem_limit_bytes=vmem_limit,
        ),
        cost_estimate=cost,
    )(xf, xf, w2, b2)

    # ---- extract valid outputs; result is already NCHW (no transpose) -------
    out_flat = out_flat[:B]
    l2 = out_h * s * Wp
    if n_total >= l2:
        ov = out_flat[:, :, :l2]
    else:
        ov = jnp.pad(out_flat, ((0, 0), (0, 0), (0, l2 - n_total)))
    ov = ov.reshape(B, Cout, out_h, s * Wp)
    return ov[:, :, :, 0:(out_w - 1) * s + 1:s]      # (B, Cout, out_h, out_w)


# -----------------------------------------------------------------------------
# Demo / self-check
# -----------------------------------------------------------------------------
if __name__ == "__main__":
    def run_case(key, B, Cin, H, W, Cout, k, stride, padding):
        kx, kw_, kb = jax.random.split(key, 3)
        x = jax.random.normal(kx, (B, Cin, H, W), dtype=jnp.float32)

        # Kaiming-uniform-like init, matching the module's parameter shapes.
        fan_in = Cin * k * k
        bound_w = math.sqrt(6.0 / fan_in) / math.sqrt(1 + 5.0)
        weight = jax.random.uniform(kw_, (Cout, Cin, k, k), minval=-bound_w,
                                    maxval=bound_w, dtype=jnp.float32)
        bound_b = 1.0 / math.sqrt(fan_in)
        bias = jax.random.uniform(kb, (Cout, 1, 1), minval=-bound_b,
                                  maxval=bound_b, dtype=jnp.float32)

        out = convolution_pload_forward(x, weight, bias,
                                        stride=stride, padding=padding)
        out = jax.block_until_ready(out)

        ref = jax.lax.conv_general_dilated(
            x, weight, window_strides=(stride, stride),
            padding=[(padding, padding), (padding, padding)],
            dimension_numbers=("NCHW", "OIHW", "NCHW"),
        ) + bias.reshape(1, Cout, 1, 1)

        assert out.shape == ref.shape, (out.shape, ref.shape)
        err = float(jnp.max(jnp.abs(out - ref)))
        assert jnp.allclose(out, ref, atol=5e-4, rtol=5e-4), err
        return out

    key = jax.random.PRNGKey(0)
    k1, k2 = jax.random.split(key)

    # Main config (same as the PyTorch module demo): 3x3, stride 1, padding 1.
    run_case(k1, B=2, Cin=4, H=16, W=16, Cout=8, k=3, stride=1, padding=1)
    # Generality check: stride 2, no padding.
    run_case(k2, B=2, Cin=3, H=9, W=9, Cout=16, k=3, stride=2, padding=0)

    print("KERNEL_OK")
</pallas_src>

<mosaic_0001>
module attributes {stable_mosaic.version = 11 : i64} {
  func.func @kernel(%arg0: i32, %arg1: i32, %arg2: memref<1x8x384xf32, #tpu.memory_space<vmem>>, %arg3: memref<1x8x128xf32, #tpu.memory_space<vmem>>, %arg4: memref<8x72xf32, #tpu.memory_space<vmem>>, %arg5: memref<8x1xf32, #tpu.memory_space<vmem>>, %arg6: memref<1x8x384xf32, #tpu.memory_space<vmem>>, %arg7: memref<72x384xf32, #tpu.memory_space<vmem>>) attributes {dimension_semantics = [#tpu.dimension_semantics<parallel>, #tpu.dimension_semantics<parallel>], iteration_bounds = array<i64: 2, 1>, scalar_prefetch = 0 : i64, scratch_operands = 1 : i64, tpu.core_type = #tpu.core_type<tc>, window_params = [{transform_indices = @transform_0, window_bounds = array<i64: 1, 8, 384>}, {transform_indices = @transform_1, window_bounds = array<i64: 1, 8, 128>}, {pipeline_mode = #tpu.pipeline_mode<synchronous>, transform_indices = @transform_2, window_bounds = array<i64: 8, 72>}, {pipeline_mode = #tpu.pipeline_mode<synchronous>, transform_indices = @transform_3, window_bounds = array<i64: 8, 1>}, {transform_indices = @transform_4, window_bounds = array<i64: 1, 8, 384>}]} {
    %c0 = arith.constant 0 : index
    %c0_0 = arith.constant 0 : index
    %c0_1 = arith.constant 0 : index
    %0 = vector.load %arg2[%c0, %c0_0, %c0_1] : memref<1x8x384xf32, #tpu.memory_space<vmem>>, vector<1x8x384xf32>
    %1 = vector.shape_cast %0 : vector<1x8x384xf32> to vector<8x384xf32>
    %c0_2 = arith.constant 0 : index
    %c0_3 = arith.constant 0 : index
    %2 = vector.load %arg7[%c0_2, %c0_3] : memref<72x384xf32, #tpu.memory_space<vmem>>, vector<8x384xf32>
    tpu.vector_store %arg7[%c0_2, %c0_3], %1 {strides = array<i32>} : memref<72x384xf32, #tpu.memory_space<vmem>>, vector<8x384xf32>,
    %c0_4 = arith.constant 0 : index
    %c0_5 = arith.constant 0 : index
    %c1 = arith.constant 1 : index
    %3 = vector.load %arg2[%c0_4, %c0_5, %c1] : memref<1x8x384xf32, #tpu.memory_space<vmem>>, vector<1x8x383xf32>
    %4 = vector.shape_cast %3 : vector<1x8x383xf32> to vector<8x383xf32>
    %c8 = arith.constant 8 : index
    %c0_6 = arith.constant 0 : index
    %5 = vector.load %arg7[%c8, %c0_6] : memref<72x384xf32, #tpu.memory_space<vmem>>, vector<8x383xf32>
    tpu.vector_store %arg7[%c8, %c0_6], %4 {strides = array<i32>} : memref<72x384xf32, #tpu.memory_space<vmem>>, vector<8x383xf32>,
    %c0_7 = arith.constant 0 : index
    %c0_8 = arith.constant 0 : index
    %c0_9 = arith.constant 0 : index
    %6 = vector.load %arg3[%c0_7, %c0_8, %c0_9] : memref<1x8x128xf32, #tpu.memory_space<vmem>>, vector<1x8x1xf32>
    %7 = vector.shape_cast %6 : vector<1x8x1xf32> to vector<8x1xf32>
    %c8_10 = arith.constant 8 : index
    %c383 = arith.constant 383 : index
    %8 = vector.load %arg7[%c8_10, %c383] : memref<72x384xf32, #tpu.memory_space<vmem>>, vector<8x1xf32>
    tpu.vector_store %arg7[%c8_10, %c383], %7 {strides = array<i32>} : memref<72x384xf32, #tpu.memory_space<vmem>>, vector<8x1xf32>,
    %c0_11 = arith.constant 0 : index
    %c0_12 = arith.constant 0 : index
    %c2 = arith.constant 2 : index
    %9 = vector.load %arg2[%c0_11, %c0_12, %c2] : memref<1x8x384xf32, #tpu.memory_space<vmem>>, vector<1x8x382xf32>
    %10 = vector.shape_cast %9 : vector<1x8x382xf32> to vector<8x382xf32>
    %c16 = arith.constant 16 : index
    %c0_13 = arith.constant 0 : index
    %11 = vector.load %arg7[%c16, %c0_13] : memref<72x384xf32, #tpu.memory_space<vmem>>, vector<8x382xf32>
    tpu.vector_store %arg7[%c16, %c0_13], %10 {strides = array<i32>} : memref<72x384xf32, #tpu.memory_space<vmem>>, vector<8x382xf32>,
    %c0_14 = arith.constant 0 : index
    %c0_15 = arith.constant 0 : index
    %c0_16 = arith.constant 0 : index
    %12 = vector.load %arg3[%c0_14, %c0_15, %c0_16] : memref<1x8x128xf32, #tpu.memory_space<vmem>>, vector<1x8x2xf32>
    %13 = vector.shape_cast %12 : vector<1x8x2xf32> to vector<8x2xf32>
    %c16_17 = arith.constant 16 : index
    %c382 = arith.constant 382 : index
    %14 = vector.load %arg7[%c16_17, %c382] : memref<72x384xf32, #tpu.memory_space<vmem>>, vector<8x2xf32>
    tpu.vector_store %arg7[%c16_17, %c382], %13 {strides = array<i32>} : memref<72x384xf32, #tpu.memory_space<vmem>>, vector<8x2xf32>,
    %c0_18 = arith.constant 0 : index
    %c0_19 = arith.constant 0 : index
    %c18 = arith.constant 18 : index
    %15 = vector.load %arg2[%c0_18, %c0_19, %c18] : memref<1x8x384xf32, #tpu.memory_space<vmem>>, vector<1x8x366xf32>
    %16 = vector.shape_cast %15 : vector<1x8x366xf32> to vector<8x366xf32>
    %c24 = arith.constant 24 : index
    %c0_20 = arith.constant 0 : index
    %17 = vector.load %arg7[%c24, %c0_20] : memref<72x384xf32, #tpu.memory_space<vmem>>, vector<8x366xf32>
    tpu.vector_store %arg7[%c24, %c0_20], %16 {strides = array<i32>} : memref<72x384xf32, #tpu.memory_space<vmem>>, vector<8x366xf32>,
    %c0_21 = arith.constant 0 : index
    %c0_22 = arith.constant 0 : index
    %c0_23 = arith.constant 0 : index
    %18 = vector.load %arg3[%c0_21, %c0_22, %c0_23] : memref<1x8x128xf32, #tpu.memory_space<vmem>>, vector<1x8x18xf32>
    %19 = vector.shape_cast %18 : vector<1x8x18xf32> to vector<8x18xf32>
    %c24_24 = arith.constant 24 : index
    %c366 = arith.constant 366 : index
    %20 = vector.load %arg7[%c24_24, %c366] : memref<72x384xf32, #tpu.memory_space<vmem>>, vector<8x18xf32>
    tpu.vector_store %arg7[%c24_24, %c366], %19 {strides = array<i32>} : memref<72x384xf32, #tpu.memory_space<vmem>>, vector<8x18xf32>,
    %c0_25 = arith.constant 0 : index
    %c0_26 = arith.constant 0 : index
    %c19 = arith.constant 19 : index
    %21 = vector.load %arg2[%c0_25, %c0_26, %c19] : memref<1x8x384xf32, #tpu.memory_space<vmem>>, vector<1x8x365xf32>
    %22 = vector.shape_cast %21 : vector<1x8x365xf32> to vector<8x365xf32>
    %c32 = arith.constant 32 : index
    %c0_27 = arith.constant 0 : index
    %23 = vector.load %arg7[%c32, %c0_27] : memref<72x384xf32, #tpu.memory_space<vmem>>, vector<8x365xf32>
    tpu.vector_store %arg7[%c32, %c0_27], %22 {strides = array<i32>} : memref<72x384xf32, #tpu.memory_space<vmem>>, vector<8x365xf32>,
    %c0_28 = arith.constant 0 : index
    %c0_29 = arith.constant 0 : index
    %c0_30 = arith.constant 0 : index
    %24 = vector.load %arg3[%c0_28, %c0_29, %c0_30] : memref<1x8x128xf32, #tpu.memory_space<vmem>>, vector<1x8x19xf32>
    %25 = vector.shape_cast %24 : vector<1x8x19xf32> to vector<8x19xf32>
    %c32_31 = arith.constant 32 : index
    %c365 = arith.constant 365 : index
    %26 = vector.load %arg7[%c32_31, %c365] : memref<72x384xf32, #tpu.memory_space<vmem>>, vector<8x19xf32>
    tpu.vector_store %arg7[%c32_31, %c365], %25 {strides = array<i32>} : memref<72x384xf32, #tpu.memory_space<vmem>>, vector<8x19xf32>,
    %c0_32 = arith.constant 0 : index
    %c0_33 = arith.constant 0 : index
    %c20 = arith.constant 20 : index
    %27 = vector.load %arg2[%c0_32, %c0_33, %c20] : memref<1x8x384xf32, #tpu.memory_space<vmem>>, vector<1x8x364xf32>
    %28 = vector.shape_cast %27 : vector<1x8x364xf32> to vector<8x364xf32>
    %c40 = arith.constant 40 : index
    %c0_34 = arith.constant 0 : index
    %29 = vector.load %arg7[%c40, %c0_34] : memref<72x384xf32, #tpu.memory_space<vmem>>, vector<8x364xf32>
    tpu.vector_store %arg7[%c40, %c0_34], %28 {strides = array<i32>} : memref<72x384xf32, #tpu.memory_space<vmem>>, vector<8x364xf32>,
    %c0_35 = arith.constant 0 : index
    %c0_36 = arith.constant 0 : index
    %c0_37 = arith.constant 0 : index
    %30 = vector.load %arg3[%c0_35, %c0_36, %c0_37] : memref<1x8x128xf32, #tpu.memory_space<vmem>>, vector<1x8x20xf32>
    %31 = vector.shape_cast %30 : vector<1x8x20xf32> to vector<8x20xf32>
    %c40_38 = arith.constant 40 : index
    %c364 = arith.constant 364 : index
    %32 = vector.load %arg7[%c40_38, %c364] : memref<72x384xf32, #tpu.memory_space<vmem>>, vector<8x20xf32>
    tpu.vector_store %arg7[%c40_38, %c364], %31 {strides = array<i32>} : memref<72x384xf32, #tpu.memory_space<vmem>>, vector<8x20xf32>,
    %c0_39 = arith.constant 0 : index
    %c0_40 = arith.constant 0 : index
    %c36 = arith.constant 36 : index
    %33 = vector.load %arg2[%c0_39, %c0_40, %c36] : memref<1x8x384xf32, #tpu.memory_space<vmem>>, vector<1x8x348xf32>
    %34 = vector.shape_cast %33 : vector<1x8x348xf32> to vector<8x348xf32>
    %c48 = arith.constant 48 : index
    %c0_41 = arith.constant 0 : index
    %35 = vector.load %arg7[%c48, %c0_41] : memref<72x384xf32, #tpu.memory_space<vmem>>, vector<8x348xf32>
    tpu.vector_store %arg7[%c48, %c0_41], %34 {strides = array<i32>} : memref<72x384xf32, #tpu.memory_space<vmem>>, vector<8x348xf32>,
    %c0_42 = arith.constant 0 : index
    %c0_43 = arith.constant 0 : index
    %c0_44 = arith.constant 0 : index
    %36 = vector.load %arg3[%c0_42, %c0_43, %c0_44] : memref<1x8x128xf32, #tpu.memory_space<vmem>>, vector<1x8x36xf32>
    %37 = vector.shape_cast %36 : vector<1x8x36xf32> to vector<8x36xf32>
    %c48_45 = arith.constant 48 : index
    %c348 = arith.constant 348 : index
    %38 = vector.load %arg7[%c48_45, %c348] : memref<72x384xf32, #tpu.memory_space<vmem>>, vector<8x36xf32>
    tpu.vector_store %arg7[%c48_45, %c348], %37 {strides = array<i32>} : memref<72x384xf32, #tpu.memory_space<vmem>>, vector<8x36xf32>,
    %c0_46 = arith.constant 0 : index
    %c0_47 = arith.constant 0 : index
    %c37 = arith.constant 37 : index
    %39 = vector.load %arg2[%c0_46, %c0_47, %c37] : memref<1x8x384xf32, #tpu.memory_space<vmem>>, vector<1x8x347xf32>
    %40 = vector.shape_cast %39 : vector<1x8x347xf32> to vector<8x347xf32>
    %c56 = arith.constant 56 : index
    %c0_48 = arith.constant 0 : index
    %41 = vector.load %arg7[%c56, %c0_48] : memref<72x384xf32, #tpu.memory_space<vmem>>, vector<8x347xf32>
    tpu.vector_store %arg7[%c56, %c0_48], %40 {strides = array<i32>} : memref<72x384xf32, #tpu.memory_space<vmem>>, vector<8x347xf32>,
    %c0_49 = arith.constant 0 : index
    %c0_50 = arith.constant 0 : index
    %c0_51 = arith.constant 0 : index
    %42 = vector.load %arg3[%c0_49, %c0_50, %c0_51] : memref<1x8x128xf32, #tpu.memory_space<vmem>>, vector<1x8x37xf32>
    %43 = vector.shape_cast %42 : vector<1x8x37xf32> to vector<8x37xf32>
    %c56_52 = arith.constant 56 : index
    %c347 = arith.constant 347 : index
    %44 = vector.load %arg7[%c56_52, %c347] : memref<72x384xf32, #tpu.memory_space<vmem>>, vector<8x37xf32>
    tpu.vector_store %arg7[%c56_52, %c347], %43 {strides = array<i32>} : memref<72x384xf32, #tpu.memory_space<vmem>>, vector<8x37xf32>,
    %c0_53 = arith.constant 0 : index
    %c0_54 = arith.constant 0 : index
    %c38 = arith.constant 38 : index
    %45 = vector.load %arg2[%c0_53, %c0_54, %c38] : memref<1x8x384xf32, #tpu.memory_space<vmem>>, vector<1x8x346xf32>
    %46 = vector.shape_cast %45 : vector<1x8x346xf32> to vector<8x346xf32>
    %c64 = arith.constant 64 : index
    %c0_55 = arith.constant 0 : index
    %47 = vector.load %arg7[%c64, %c0_55] : memref<72x384xf32, #tpu.memory_space<vmem>>, vector<8x346xf32>
    tpu.vector_store %arg7[%c64, %c0_55], %46 {strides = array<i32>} : memref<72x384xf32, #tpu.memory_space<vmem>>, vector<8x346xf32>,
    %c0_56 = arith.constant 0 : index
    %c0_57 = arith.constant 0 : index
    %c0_58 = arith.constant 0 : index
    %48 = vector.load %arg3[%c0_56, %c0_57, %c0_58] : memref<1x8x128xf32, #tpu.memory_space<vmem>>, vector<1x8x38xf32>
    %49 = vector.shape_cast %48 : vector<1x8x38xf32> to vector<8x38xf32>
    %c64_59 = arith.constant 64 : index
    %c346 = arith.constant 346 : index
    %50 = vector.load %arg7[%c64_59, %c346] : memref<72x384xf32, #tpu.memory_space<vmem>>, vector<8x38xf32>
    tpu.vector_store %arg7[%c64_59, %c346], %49 {strides = array<i32>} : memref<72x384xf32, #tpu.memory_space<vmem>>, vector<8x38xf32>,
    %c0_60 = arith.constant 0 : index
    %c0_61 = arith.constant 0 : index
    %51 = vector.load %arg4[%c0_60, %c0_61] : memref<8x72xf32, #tpu.memory_space<vmem>>, vector<8x72xf32>
    %c0_62 = arith.constant 0 : index
    %c0_63 = arith.constant 0 : index
    %52 = vector.load %arg5[%c0_62, %c0_63] : memref<8x1xf32, #tpu.memory_space<vmem>>, vector<8x1xf32>
    %c0_64 = arith.constant 0 : index
    %c0_65 = arith.constant 0 : index
    %53 = vector.load %arg7[%c0_64, %c0_65] : memref<72x384xf32, #tpu.memory_space<vmem>>, vector<72x384xf32>
    %cst = arith.constant dense<0.000000e+00> : vector<8x384xf32>
    %54 = tpu.matmul %51, %53, %cst {dimension_numbers = #tpu.dot_dimension_numbers<[1], [0], [0], [1], [0, 0, 1, 1], [], []>} : vector<8x72xf32>, vector<72x384xf32>, vector<8x384xf32> -> vector<8x384xf32>
    %55 = vector.broadcast %52 : vector<8x1xf32> to vector<8x384xf32>
    %56 = arith.addf %54, %55 : vector<8x384xf32>
    %c0_66 = arith.constant 0 : index
    %c0_67 = arith.constant 0 : index
    %c0_68 = arith.constant 0 : index
    %57 = vector.load %arg6[%c0_66, %c0_67, %c0_68] : memref<1x8x384xf32, #tpu.memory_space<vmem>>, vector<1x8x384xf32>
    %58 = vector.shape_cast %57 : vector<1x8x384xf32> to vector<8x384xf32>
    %59 = vector.shape_cast %56 : vector<8x384xf32> to vector<1x8x384xf32>
    tpu.vector_store %arg6[%c0_66, %c0_67, %c0_68], %59 {strides = array<i32>} : memref<1x8x384xf32, #tpu.memory_space<vmem>>, vector<1x8x384xf32>,
    return
  }
  func.func @transform_0(%arg0: i32, %arg1: i32) -> (i32, i32, i32) {
    %c0_i32 = arith.constant 0 : i32
    %c0_i32_0 = arith.constant 0 : i32
    return %arg0, %c0_i32, %arg1 : i32, i32, i32
  }
  func.func @transform_1(%arg0: i32, %arg1: i32) -> (i32, i32, i32) {
    %c1_i32 = arith.constant 1 : i32
    %0 = arith.addi %arg1, %c1_i32 : i32
    %c3_i32 = arith.constant 3 : i32
    %1 = arith.muli %0, %c3_i32 : i32
    %c0_i32 = arith.constant 0 : i32
    %c0_i32_0 = arith.constant 0 : i32
    return %arg0, %c0_i32, %1 : i32, i32, i32
  }
  func.func @transform_2(%arg0: i32, %arg1: i32) -> (i32, i32) {
    %c0_i32 = arith.constant 0 : i32
    %c0_i32_0 = arith.constant 0 : i32
    %c0_i32_1 = arith.constant 0 : i32
    return %c0_i32, %c0_i32_0 : i32, i32
  }
  func.func @transform_3(%arg0: i32, %arg1: i32) -> (i32, i32) {
    %c0_i32 = arith.constant 0 : i32
    %c0_i32_0 = arith.constant 0 : i32
    %c0_i32_1 = arith.constant 0 : i32
    return %c0_i32, %c0_i32_0 : i32, i32
  }
  func.func @transform_4(%arg0: i32, %arg1: i32) -> (i32, i32, i32) {
    %c0_i32 = arith.constant 0 : i32
    %c0_i32_0 = arith.constant 0 : i32
    return %arg0, %c0_i32, %arg1 : i32, i32, i32
  }
}

</mosaic_0001>

<bundles_post_ra>
// kernel: convolution_pload_forward.1
= control target key start
LH: loop header
LB: loop body
LE: loop exit
PB: predicated region body
PF: predicated region fallthrough
CT: control target
= control target key end

     0   :  { %s830_s15 = smov 0   ;;  %s832_s16 = smov 0   ;;  %s941_s0 = inlined_call_operand.vmem [shape: f32[2,8,768], index: 0, kind: input, shape index: {}, may-alias: {0,1}]   ;;  %s942_s1 = inlined_call_operand.vmem [shape: f32[2,8,768], index: 1, kind: input, shape index: {}, may-alias: {0,1}]   ;;  %s943_s2 = inlined_call_operand.vmem [shape: f32[8,72], index: 2, kind: input, shape index: {}]   ;;  %s944_s3 = inlined_call_operand.vmem [shape: f32[8,1], index: 3, kind: input, shape index: {}]   ;;  %s945_s4 = inlined_call_operand.vmem [shape: f32[2,8,384], index: 4, kind: output, shape index: {}]  }
   0x1   :  { %s834_s17 = smov 0  }
   0x2 LB: > { %s26_s18 = sadd.s32 1, %s790_s16  ;;  %p722_p0 = scmp.ge.s32.totalorder %s794_s17, 1  ;;  %s794_s17 = sphi %s834_s17, %s14_s17   ;;  %s790_s16 = sphi %s832_s16, %s947_s16   ;;  %s786_s15 = sphi %s830_s15, %s946_s15  }
   0x3   : > { %p28_p1 = scmp.ge.s32.totalorder %s26_s18, 2  ;;  %p206_p2 = scmp.lt.s32.totalorder %s794_s17, 3 }
   0x5   : > { %s949_s18 = smov (%p28_p1, %s26_s18), 0  ;;  %p207_p3 = pnand %p722_p0, %p206_p2 }
   0x6   : > { %p251_p4 = scmp.lt.s32.totalorder (!%p207_p3), %s786_s15, 1  ;;  %s796_s24 = smov (!%p207_p3), 90  }
   0x7   : > { %210 = sbr.rel (%p207_p3) target bundleno = 346 (0x15a), region = 36  ;;  %s797_s25 = smov (!%p207_p3), 91  }
   0x8   : > { %s798_s26 = smov (!%p207_p3), 92   ;;  %s799_s30 = smov (!%p207_p3), 108  }
   0x9   : > { %s800_s5 = smov (!%p207_p3), 109   ;;  %s801_s6 = smov (!%p207_p3), 110  }
   0xa   : > { %s802_s7 = smov (!%p207_p3), 126   ;;  %s803_s8 = smov (!%p207_p3), 127  }
   0xc   : > { %s951_s15 = smov (!%p251_p4, %s786_s15), 1  ;;  %vm440_vm0 = vcmask 752640   ;;  %vm454_vm1 = vcmask 1048288   ;;  %vm496_vm2 = vcmask 736256   ;;  %vm468_vm3 = vcmask 744448   ;;  %v513_v43 = vld [vmem:[%s944_s3] sm:$0xff] }
   0xd   : > { %s733_s19 = smul.u32 48, %s951_s15  ;;  %vm510_vm4 = vcmask 1048272   ;;  %vm482_vm5 = vcmask 1048280   ;;  %vm356_vm6 = vcmask 900096   ;;  %vm412_vm7 = vcmask 883712   ;;  %v512_v58 = vld [vmem:[%s943_s2] sm:$0xff] }
   0xe   : > { %vm370_vm8 = vcmask 1048432   ;;  %vm426_vm9 = vcmask 1048416   ;;  %vm384_vm10 = vcmask 891904   ;;  %vm398_vm11 = vcmask 1048424   ;;  %s735_s13 = smul.u32 24, %s951_s15 }
   0xf   : > { %s258_s22 = scalar_lea.vmem %s941_s0, %s733_s19  ;;  %s732_s23 = sadd.s32 24, %s733_s19  ;;  %vm328_vm12 = vcmask 1031168   ;;  %vm342_vm13 = vcmask 1048560   ;;  %v804_v44 = vmov 0   ;;  %vm300_vm14 = vcmask 1039360  }
  0x10   : > { %v854_v0 = vld [vmem:[%s258_s22 + $0x10] sm:$0xff]  ;;  %v858_v1 = vld [vmem:[%s258_s22] sm:$0xff]  ;;  %v861_v2 = vld [vmem:[%s258_s22 + $0x8] sm:$0xff]  ;;  %s269_s29 = scalar_lea.vmem %s942_s1, %s732_s23  ;;  %770 = vset.pattern.permute.xlu2 %v804_v44  ;;  %771 = vset.pattern.permute.xlu0 %v804_v44  ;;  %vm314_vm15 = vcmask 1048568   ;;  %s280_s20 = scalar_lea.vmem %s945_s4, %s735_s13 }
  0x11   : > { %494 = vrot.lane.b32.xlu0 %v854_v0, %s796_s24  ;;  %466 = vrot.lane.b32.xlu1 %v854_v0, %s797_s25  ;;  %v505_v3 = vld [vmem:[%s269_s29] sm:$0xff] }
  0x12   : > { %438 = vrot.lane.b32.xlu2 %v854_v0, %s798_s26 }
  0x19   : > { %507 = vrot.lane.b32.xlu0 %v505_v3, %s796_s24  ;;  %479 = vrot.lane.b32.xlu1 %v505_v3, %s797_s25 }
  0x1a   : > { %451 = vrot.lane.b32.xlu2 %v505_v3, %s798_s26 }
  0x21   : > { %490 = vrot.lane.b32.xlu1 %v858_v1, %s796_s24  ;;  %410 = vrot.lane.b32.xlu0 %v854_v0, %s799_s30 }
  0x22   : > { %492 = vrot.lane.b32.xlu2 %v861_v2, %s796_s24 }
  0x29   : > { %423 = vrot.lane.b32.xlu0 %v505_v3, %s799_s30  ;;  %382 = vrot.lane.b32.xlu1 %v854_v0, %s800_s5 }
  0x2a   : > { %462 = vrot.lane.b32.xlu2 %v858_v1, %s797_s25 }
  0x31   : > { %464 = vrot.lane.b32.xlu0 %v861_v2, %s797_s25  ;;  %395 = vrot.lane.b32.xlu1 %v505_v3, %s800_s5 }
  0x32   : > { %354 = vrot.lane.b32.xlu2 %v854_v0, %s801_s6 }
  0x39   : > { %434 = vrot.lane.b32.xlu0 %v858_v1, %s798_s26  ;;  %436 = vrot.lane.b32.xlu1 %v861_v2, %s798_s26 }
  0x3a   : > { %367 = vrot.lane.b32.xlu2 %v505_v3, %s801_s6 }
  0x41   : > { %406 = vrot.lane.b32.xlu1 %v858_v1, %s799_s30  ;;  %326 = vrot.lane.b32.xlu0 %v854_v0, %s802_s7 }
  0x42   : > { %408 = vrot.lane.b32.xlu2 %v861_v2, %s799_s30 }
  0x49   : > { %339 = vrot.lane.b32.xlu0 %v505_v3, %s802_s7  ;;  %298 = vrot.lane.b32.xlu1 %v854_v0, %s803_s8 }
  0x4a   : > { %378 = vrot.lane.b32.xlu2 %v858_v1, %s800_s5 }
  0x51   : > { %380 = vrot.lane.b32.xlu0 %v861_v2, %s800_s5  ;;  %311 = vrot.lane.b32.xlu1 %v505_v3, %s803_s8 }
  0x52   : > { %350 = vrot.lane.b32.xlu2 %v858_v1, %s801_s6 }
  0x59   : > { %352 = vrot.lane.b32.xlu0 %v861_v2, %s801_s6  ;;  %322 = vrot.lane.b32.xlu1 %v858_v1, %s802_s7 }
  0x5a   : > { %324 = vrot.lane.b32.xlu2 %v861_v2, %s802_s7 }
  0x61   : > { %296 = vrot.lane.b32.xlu1 %v861_v2, %s803_s8  ;;  %294 = vrot.lane.b32.xlu0 %v858_v1, %s803_s8 }
  0x62   : > { %543 = vperm.xlu2 %770, %v513_v43  }
  0x6c   : > { %v887_v4 = vpop.permute.xlu2 %438 }
  0x6d   : > { %448 = vst.msk [vmem:[#allocation2 + $0xa0] sm:$0xff] %vm440_vm0, %v887_v4 }
  0x74   : > { %v452_v5 = vpop.permute.xlu2 %451 }
  0x75   : > { %455 = vst.msk [vmem:[#allocation2 + $0xa0] sm:$0xff] %vm454_vm1, %v452_v5 }
  0x7c   : > { %v493_v6 = vpop.permute.xlu2 %492  ;;  %v534_v20 = vld [vmem:[#allocation2 + $0xa0] sm:$0xff] }
  0x83   : > { %v495_v7 = vpop.permute.xlu0 %494  ;;  %v467_v8 = vpop.permute.xlu1 %466 }
  0x84   : > { %v498_v9 = vsel %vm496_vm2, %v493_v6, %v495_v7  ;;  %504 = vst.msk [vmem:[#allocation2 + $0xd0] sm:$0xff] %vm496_vm2, %v495_v7  ;;  %v463_v10 = vpop.permute.xlu2 %462 }
  0x85   : > { %577 = vmatpush.msra.mxu1 %v498_v9  ;;  %476 = vst.msk [vmem:[#allocation2 + $0xb8] sm:$0xff] %vm468_vm3, %v467_v8 }
  0x8b   : > { %v508_v11 = vpop.permute.xlu0 %507  ;;  %v480_v12 = vpop.permute.xlu1 %479 }
  0x8c   : > { %511 = vst.msk [vmem:[#allocation2 + $0xd0] sm:$0xff] %vm510_vm4, %v508_v11  ;;  %v894_v13 = vpop.permute.xlu2 %354 }
  0x8d   : > { %483 = vst.msk [vmem:[#allocation2 + $0xb8] sm:$0xff] %vm482_vm5, %v480_v12 }
  0x8e   : > { %364 = vst.msk [vmem:[#allocation2 + $0x58] sm:$0xff] %vm356_vm6, %v894_v13 }
  0x93   : > { %v491_v14 = vpop.permute.xlu1 %490  ;;  %v411_v15 = vpop.permute.xlu0 %410  ;;  %v540_v16 = vld [vmem:[#allocation2 + $0xd0] sm:$0xff] }
  0x94   : > { %v497_v17 = vsel %vm496_vm2, %v491_v14, %v493_v6  ;;  %420 = vst.msk [vmem:[#allocation2 + $0x88] sm:$0xff] %vm412_vm7, %v411_v15  ;;  %v368_v18 = vpop.permute.xlu2 %367  ;;  %597 = vmatpush.msra.mxu2 %v540_v16  ;;  %v537_v19 = vld [vmem:[#allocation2 + $0xb8] sm:$0xff] }
  0x95   : > { %557 = vmatpush.msra.mxu0 %v497_v17  ;;  %371 = vst.msk [vmem:[#allocation2 + $0x58] sm:$0xff] %vm370_vm8, %v368_v18 }
  0x96   : > { %598 = vmatpush.msra.mxu2 %v537_v19 }
  0x98   : > { %599 = vmatpush.msra.mxu2 %v534_v20 }
  0x9b   : > { %v424_v21 = vpop.permute.xlu0 %423  ;;  %v383_v22 = vpop.permute.xlu1 %382 }
  0x9c   : > { %427 = vst.msk [vmem:[#allocation2 + $0x88] sm:$0xff] %vm426_vm9, %v424_v21  ;;  %v409_v23 = vpop.permute.xlu2 %408  ;;  %v525_v34 = vld [vmem:[#allocation2 + $0x58] sm:$0xff] }
  0x9d   : > { %392 = vst.msk [vmem:[#allocation2 + $0x70] sm:$0xff] %vm384_vm10, %v383_v22  ;;  %v414_v24 = vsel %vm412_vm7, %v409_v23, %v411_v15 }
  0xa3   : > { %v465_v25 = vpop.permute.xlu0 %464  ;;  %v396_v26 = vpop.permute.xlu1 %395  ;;  %v531_v27 = vld [vmem:[#allocation2 + $0x88] sm:$0xff] }
  0xa4   : > { %v469_v28 = vsel %vm468_vm3, %v463_v10, %v465_v25  ;;  %v470_v29 = vsel %vm468_vm3, %v465_v25, %v467_v8  ;;  %399 = vst.msk [vmem:[#allocation2 + $0x70] sm:$0xff] %vm398_vm11, %v396_v26  ;;  %v379_v30 = vpop.permute.xlu2 %378  ;;  %600 = vmatpush.msra.mxu2 %v531_v27 }
  0xa5   : > { %558 = vmatpush.msra.mxu0 %v469_v28  ;;  %578 = vmatpush.msra.mxu1 %v470_v29 }
  0xab   : > { %v435_v31 = vpop.permute.xlu0 %434  ;;  %v437_v32 = vpop.permute.xlu1 %436  ;;  %v528_v33 = vld [vmem:[#allocation2 + $0x70] sm:$0xff] }
  0xac   : > { %v441_v35 = vsel %vm440_vm0, %v435_v31, %v437_v32  ;;  %v442_v36 = vsel %vm440_vm0, %v437_v32, %v887_v4  ;;  %v351_v37 = vpop.permute.xlu2 %350  ;;  %601 = vmatpush.msra.mxu2 %v528_v33  ;;  %vm546_vm0 = vcmask 588800  }
  0xad   : > { %559 = vmatpush.msra.mxu0 %v441_v35  ;;  %579 = vmatpush.msra.mxu1 %v442_v36 }
  0xae   : > { %602 = vmatpush.msra.mxu2 %v525_v34 }
  0xaf   : > { %580 = vmatpush.msra.mxu1 %v414_v24 }
  0xb3   : > { %v407_v38 = vpop.permute.xlu1 %406  ;;  %v327_v39 = vpop.permute.xlu0 %326 }
  0xb4   : > { %v413_v40 = vsel %vm412_vm7, %v407_v38, %v409_v23  ;;  %336 = vst.msk [vmem:[#allocation2 + $0x40] sm:$0xff] %vm328_vm12, %v327_v39  ;;  %v325_v41 = vpop.permute.xlu2 %324 }
  0xb5   : > { %v330_v42 = vsel %vm328_vm12, %v325_v41, %v327_v39  ;;  %560 = vmatpush.msra.mxu0 %v413_v40 }
  0xbb   : > { %v340_v45 = vpop.permute.xlu0 %339  ;;  %v299_v46 = vpop.permute.xlu1 %298 }
  0xbc   : > { %343 = vst.msk [vmem:[#allocation2 + $0x40] sm:$0xff] %vm342_vm13, %v340_v45  ;;  %v544_v63 = vpop.permute.xlu2 %543 }
  0xbd   : > { %308 = vst.msk [vmem:[#allocation2 + $0x28] sm:$0xff] %vm300_vm14, %v299_v46 }
  0xc3   : > { %v381_v47 = vpop.permute.xlu0 %380  ;;  %v312_v48 = vpop.permute.xlu1 %311  ;;  %v522_v49 = vld [vmem:[#allocation2 + $0x40] sm:$0xff] }
  0xc4   : > { %v385_v50 = vsel %vm384_vm10, %v379_v30, %v381_v47  ;;  %v386_v51 = vsel %vm384_vm10, %v381_v47, %v383_v22  ;;  %315 = vst.msk [vmem:[#allocation2 + $0x28] sm:$0xff] %vm314_vm15, %v312_v48  ;;  %603 = vmatpush.msra.mxu2 %v522_v49 }
  0xc5   : > { %561 = vmatpush.msra.mxu0 %v385_v50  ;;  %581 = vmatpush.msra.mxu1 %v386_v51 }
  0xcb   : > { %v353_v52 = vpop.permute.xlu0 %352  ;;  %v323_v53 = vpop.permute.xlu1 %322  ;;  %v519_v54 = vld [vmem:[#allocation2 + $0x28] sm:$0xff] }
  0xcc   : > { %v357_v55 = vsel %vm356_vm6, %v351_v37, %v353_v52  ;;  %v358_v56 = vsel %vm356_vm6, %v353_v52, %v894_v13  ;;  %v329_v57 = vsel %vm328_vm12, %v323_v53, %v325_v41  ;;  %604 = vmatpush.msra.mxu2 %v519_v54 }
  0xcd   : > { %562 = vmatpush.msra.mxu0 %v357_v55  ;;  %582 = vmatpush.msra.mxu1 %v358_v56 }
  0xce   : > { %605 = vmatpush.msra.mxu2 %v854_v0 }
  0xcf   : > { %563 = vmatpush.msra.mxu0 %v329_v57  ;;  %583 = vmatpush.msra.mxu1 %v330_v42 }
  0xd0   : > { %728 = vmatmul.msk.f32.vlgmr.msra.gmra.mxu2 %vm546_vm0, %v512_v58 }
  0xd3   : > { %v297_v59 = vpop.permute.xlu1 %296  ;;  %v295_v60 = vpop.permute.xlu0 %294 }
  0xd4   : > { %v302_v61 = vsel %vm300_vm14, %v297_v59, %v299_v46  ;;  %v301_v62 = vsel %vm300_vm14, %v295_v60, %v297_v59 }
  0xd5   : > { %564 = vmatpush.msra.mxu0 %v301_v62  ;;  %584 = vmatpush.msra.mxu1 %v302_v61 }
  0xd7   : > { %565 = vmatpush.msra.mxu0 %v858_v1  ;;  %585 = vmatpush.msra.mxu1 %v861_v2 }
  0xd8   : > { %726 = vmatmul.msk.f32.vlgmr.msra.gmra.mxu0 %vm546_vm0, %v512_v58  ;;  %727 = vmatmul.msk.f32.vlgmr.msra.gmra.mxu1 %vm546_vm0, %v512_v58 }
 0x153   : > { %v607_v0 = vpop.f32.mrf.mxu2 }
 0x154   : > { %v608_v3 = vadd.f32 %v607_v0, %v544_v63 }
 0x155   : > { %v567_v4 = vpop.f32.mrf.mxu0  ;;  %v587_v5 = vpop.f32.mrf.mxu1 }
 0x156   : > { %v568_v6 = vadd.f32 %v567_v4, %v544_v63  ;;  %v588_v7 = vadd.f32 %v587_v5, %v544_v63  ;;  %612 = vst [vmem:[%s280_s20 + $0x10] sm:$0xff] %v608_v3 }
 0x158   : > { %610 = vst [vmem:[%s280_s20] sm:$0xff] %v568_v6 }
 0x159   : > { %611 = vst [vmem:[%s280_s20 + $0x8] sm:$0xff] %v588_v7 }
 0x15a PF: > { %s14_s17 = sadd.s32 1, %s794_s17   ;;  %s946_s15 = smov %s790_s16 }
 0x15b   : > { %p11_p5 = scmp.ge.s32.totalorder %s14_s17, 4   ;;  %s947_s16 = smov %s949_s18 }
 0x15d   :  { %13 = sbr.rel (!%p11_p5) target bundleno = 2 (0x2), region = 69 }

</bundles_post_ra>
